<compile_context>
chip_gen: v7x
topology: tpu7x:2x2x1
jax: 0.10.0
libtpu: 0.0.40
codegen_flags: <defaults>
</compile_context>

<pallas_src>
import jax
import jax.numpy as jnp
from jax.experimental import pallas as pl
from jax.experimental.pallas import tpu as pltpu

IN_FEATURES = 2
OUT_FEATURES = 2

LANES = 128
SUBLANES = 8
TB_ALIGN = 2 * SUBLANES * LANES  # 2048: blocks stay (8,128)/(16,128) aligned (f32/bf16)

# (N, 2)-layout callers pay one pad+transpose pass on each side of the kernel,
# so a single fused XLA op wins until the batch is very large.
_PALLAS_MIN_BATCH = 1 << 20


def _vmem_capacity_bytes():
    try:
        return int(pltpu.get_tpu_info().vmem_capacity_bytes)
    except Exception:
        return 64 * 1024 * 1024  # conservative fallback (v7x per-TC VMEM)


def _max_tile_elems():
    """Largest per-step batch-tile (elements) whose double-buffered in+out
    working set (~32*TB bytes in f32) fits in roughly half of VMEM."""
    budget = _vmem_capacity_bytes() // 2          # headroom for compiler scratch
    tb = (budget // 32) // TB_ALIGN * TB_ALIGN    # ~32 VMEM bytes per batch element
    return max(TB_ALIGN, tb)                      # ~1M elems on v7x, ~2M on v5e/v6e


def _flatten_params(weight, bias):
    # [w00, w01, w10, w11, b0, b1] in PyTorch (out_features, in_features) order.
    return jnp.concatenate([weight.reshape(-1), bias.reshape(-1)]).astype(jnp.float32)


def _linear_vpu_kernel(params_ref, xt_ref, ot_ref):
    """y[o, m, l] = w[o,0]*x[0,m,l] + w[o,1]*x[1,m,l] + b[o]   (pure VPU).

    params_ref: SMEM (6,) f32 = [w00, w01, w10, w11, b0, b1]
    xt_ref:     VMEM (2, TBS, 128)  feature-major, sublane+lane dense
    ot_ref:     VMEM (2, TBS, 128)
    """
    x0 = xt_ref[0].astype(jnp.float32)   # (TBS, 128) full unmasked slab
    x1 = xt_ref[1].astype(jnp.float32)

    w00 = params_ref[0]
    w01 = params_ref[1]
    w10 = params_ref[2]
    w11 = params_ref[3]
    b0 = params_ref[4]
    b1 = params_ref[5]

    ot_ref[0] = (x0 * w00 + x1 * w01 + b0).astype(ot_ref.dtype)
    ot_ref[1] = (x0 * w10 + x1 * w11 + b1).astype(ot_ref.dtype)


def _linear_pallas_feature_major(params, xt3, tb):
    """Core pallas_call. xt3: (2, M, 128); tb//128 must divide M."""
    _, m, _ = xt3.shape
    tbs = tb // LANES
    grid = m // tbs
    n_elems = m * LANES
    itemsize = jnp.dtype(xt3.dtype).itemsize

    block_bytes = IN_FEATURES * tb * itemsize
    vmem_limit = max(
        32 * 1024 * 1024,
        min(_vmem_capacity_bytes() - 8 * 1024 * 1024,
            4 * block_bytes + 4 * 1024 * 1024))

    return pl.pallas_call(
        _linear_vpu_kernel,
        out_shape=jax.ShapeDtypeStruct((OUT_FEATURES, m, LANES), xt3.dtype),
        grid=(grid,),
        in_specs=[
            pl.BlockSpec(memory_space=pltpu.MemorySpace.SMEM),              # params
            pl.BlockSpec((IN_FEATURES, tbs, LANES), lambda i: (0, i, 0)),   # x slab
        ],
        out_specs=pl.BlockSpec((OUT_FEATURES, tbs, LANES), lambda i: (0, i, 0)),
        compiler_params=pltpu.CompilerParams(
            dimension_semantics=("parallel",),   # independent tiles; shards across v7x TCs
            vmem_limit_bytes=int(vmem_limit),
        ),
        cost_estimate=pl.CostEstimate(
            flops=8 * n_elems,
            transcendentals=0,
            bytes_accessed=(IN_FEATURES + OUT_FEATURES) * n_elems * itemsize + 24,
        ),
    )(params, xt3)


def _choose_tbs(m, max_tb, sub):
    """Largest block sublane count (multiple of `sub`) dividing M, capped by
    max_tb elements, preferring >= 2 grid steps (keeps both v7x TCs busy)."""
    cap = min(m, max(sub, (max_tb // LANES) // sub * sub))
    if m > sub:
        cap = min(cap, max(sub, (m // 2) // sub * sub))
    tbs = (cap // sub) * sub
    while m % tbs != 0:
        tbs -= sub
    return tbs


def morph_classifier_forward_feature_major(xt3, weight, bias, *, block_n=None):
    """Zero-copy fast path. xt3 is (2, M, 128) feature-major activations (logical
    row n lives at xt3[:, n // 128, n % 128]); output has the same layout.
    No transposes, pads or extra HBM passes around the kernel."""
    f, m, l = xt3.shape
    assert f == IN_FEATURES and l == LANES
    sub = SUBLANES if jnp.dtype(xt3.dtype).itemsize >= 4 else 2 * SUBLANES
    assert m % sub == 0, "M must be a multiple of 8 (f32) / 16 (bf16)"
    if block_n is None:
        max_tb = _max_tile_elems()
    else:
        max_tb = max(sub * LANES, (block_n // (sub * LANES)) * (sub * LANES))
    tbs = _choose_tbs(m, max_tb, sub)
    params = _flatten_params(weight, bias)
    return _linear_pallas_feature_major(params, xt3, tbs * LANES)


def _choose_tb_batch(n, max_tb):
    n_aligned = pl.cdiv(n, TB_ALIGN) * TB_ALIGN
    tb = min(max_tb, n_aligned)
    # Split into >= 2 steps so both v7x TensorCores get work (no-op on v5e/v6e).
    if n_aligned > TB_ALIGN and pl.cdiv(n_aligned, tb) < 2:
        tb = max(TB_ALIGN, pl.cdiv(n_aligned // 2, TB_ALIGN) * TB_ALIGN)
    return tb


def _morph_pallas_batch_major(x, weight, bias, *, block_n=None):
    n = x.shape[0]
    if block_n is None:
        max_tb = _max_tile_elems()
    else:
        max_tb = max(TB_ALIGN, (block_n // TB_ALIGN) * TB_ALIGN)
    tb = _choose_tb_batch(n, max_tb)
    n_pad = pl.cdiv(n, tb) * tb

    # Single layout pass: pad + go feature-major / (8,128)-dense in one shot.
    # TODO(synk): callers that can keep activations feature-major end-to-end
    # should call morph_classifier_forward_feature_major and skip this pass.
    x_pad = jnp.pad(x, ((0, n_pad - n), (0, 0)))
    xt3 = x_pad.T.reshape(IN_FEATURES, n_pad // LANES, LANES)

    params = _flatten_params(weight, bias)
    out3 = _linear_pallas_feature_major(params, xt3, tb)
    # Padded tail rows evaluate to the bias and are sliced off here.
    return out3.reshape(OUT_FEATURES, n_pad).T[:n]


def morph_classifier_forward(x, weight, bias, *, block_n=None, force_pallas=False):
    """Forward pass of MorphClassifier (== nn.Linear(2, 2)(x)).

    Args:
      x:      (N, 2) float32 (PyTorch layout)
      weight: (2, 2) float32, PyTorch (out_features, in_features)
      bias:   (2,)   float32
    Returns:
      (N, 2) float32
    """
    n = x.shape[0]
    if n < _PALLAS_MIN_BATCH and not force_pallas:
        # Below the measured crossover the wrapper layout passes dominate:
        # let XLA emit one fused pass.
        return x @ weight.T + bias
    return _morph_pallas_batch_major(x, weight, bias, block_n=block_n)


if __name__ == "__main__":
    key = jax.random.PRNGKey(0)
    k_x, k_w, k_b = jax.random.split(key, 3)

    # Small XOR-style batch of 2-D points; not a multiple of 2048 so padding
    # and a multi-step pipelined grid are both exercised.
    batch = 2500
    x = jax.random.normal(k_x, (batch, IN_FEATURES), dtype=jnp.float32)

    # Deterministic init mimicking nn.Linear's U(-1/sqrt(in), 1/sqrt(in)).
    bound = 1.0 / jnp.sqrt(jnp.float32(IN_FEATURES))
    weight = jax.random.uniform(k_w, (OUT_FEATURES, IN_FEATURES),
                                minval=-bound, maxval=bound, dtype=jnp.float32)
    bias = jax.random.uniform(k_b, (OUT_FEATURES,),
                              minval=-bound, maxval=bound, dtype=jnp.float32)

    y_ref = x @ weight.T + bias  # PyTorch nn.Linear semantics

    # 1) Batch-major (PyTorch-layout) path, forced through Pallas with a small
    #    tile so the 2-step pipelined grid is exercised.
    y = morph_classifier_forward(x, weight, bias, block_n=2048, force_pallas=True)
    jax.block_until_ready(y)
    assert y.shape == (batch, OUT_FEATURES)
    assert jnp.allclose(y, y_ref, atol=1e-5, rtol=1e-5)

    # 2) Feature-major zero-copy path (the layout the kernel is optimized for).
    n_fm = pl.cdiv(batch, SUBLANES * LANES) * SUBLANES * LANES
    x_pad = jnp.pad(x, ((0, n_fm - batch), (0, 0)))
    xt3 = x_pad.T.reshape(IN_FEATURES, n_fm // LANES, LANES)
    o3 = morph_classifier_forward_feature_major(xt3, weight, bias, block_n=1024)
    jax.block_until_ready(o3)
    y_fm = o3.reshape(OUT_FEATURES, n_fm).T[:batch]
    assert jnp.allclose(y_fm, y_ref, atol=1e-5, rtol=1e-5)

    # 3) Tiny-batch dispatch path (fused XLA below the crossover).
    y_small = morph_classifier_forward(x[:8], weight, bias)
    assert jnp.allclose(y_small, y_ref[:8], atol=1e-5, rtol=1e-5)

    print("KERNEL_OK")
</pallas_src>

<mosaic_0001>
module attributes {stable_mosaic.version = 11 : i64} {
  func.func @_linear_vpu_kernel(%arg0: i32, %arg1: memref<6xf32, #tpu.memory_space<smem>>, %arg2: memref<2x16x128xf32, #tpu.memory_space<vmem>>, %arg3: memref<2x16x128xf32, #tpu.memory_space<vmem>>) attributes {dimension_semantics = [#tpu.dimension_semantics<parallel>], iteration_bounds = array<i64: 2>, scalar_prefetch = 0 : i64, scratch_operands = 0 : i64, tpu.core_type = #tpu.core_type<tc>, window_params = [{transform_indices = @transform_0, window_bounds = array<i64: 6>}, {transform_indices = @transform_1, window_bounds = array<i64: 2, 16, 128>}, {transform_indices = @transform_2, window_bounds = array<i64: 2, 16, 128>}]} {
    %c0 = arith.constant 0 : index
    %c0_0 = arith.constant 0 : index
    %c0_1 = arith.constant 0 : index
    %0 = vector.load %arg2[%c0, %c0_0, %c0_1] : memref<2x16x128xf32, #tpu.memory_space<vmem>>, vector<1x16x128xf32>
    %1 = vector.shape_cast %0 : vector<1x16x128xf32> to vector<16x128xf32>
    %c1 = arith.constant 1 : index
    %c0_2 = arith.constant 0 : index
    %c0_3 = arith.constant 0 : index
    %2 = vector.load %arg2[%c1, %c0_2, %c0_3] : memref<2x16x128xf32, #tpu.memory_space<vmem>>, vector<1x16x128xf32>
    %3 = vector.shape_cast %2 : vector<1x16x128xf32> to vector<16x128xf32>
    %c0_4 = arith.constant 0 : index
    %4 = memref.load %arg1[%c0_4] : memref<6xf32, #tpu.memory_space<smem>>
    %c1_5 = arith.constant 1 : index
    %5 = memref.load %arg1[%c1_5] : memref<6xf32, #tpu.memory_space<smem>>
    %c2 = arith.constant 2 : index
    %6 = memref.load %arg1[%c2] : memref<6xf32, #tpu.memory_space<smem>>
    %c3 = arith.constant 3 : index
    %7 = memref.load %arg1[%c3] : memref<6xf32, #tpu.memory_space<smem>>
    %c4 = arith.constant 4 : index
    %8 = memref.load %arg1[%c4] : memref<6xf32, #tpu.memory_space<smem>>
    %c5 = arith.constant 5 : index
    %9 = memref.load %arg1[%c5] : memref<6xf32, #tpu.memory_space<smem>>
    %10 = vector.broadcast %4 : f32 to vector<16x128xf32>
    %11 = arith.mulf %1, %10 : vector<16x128xf32>
    %12 = vector.broadcast %5 : f32 to vector<16x128xf32>
    %13 = arith.mulf %3, %12 : vector<16x128xf32>
    %14 = arith.addf %11, %13 : vector<16x128xf32>
    %15 = vector.broadcast %8 : f32 to vector<16x128xf32>
    %16 = arith.addf %14, %15 : vector<16x128xf32>
    %c0_6 = arith.constant 0 : index
    %c0_7 = arith.constant 0 : index
    %c0_8 = arith.constant 0 : index
    %17 = vector.load %arg3[%c0_6, %c0_7, %c0_8] : memref<2x16x128xf32, #tpu.memory_space<vmem>>, vector<1x16x128xf32>
    %18 = vector.shape_cast %17 : vector<1x16x128xf32> to vector<16x128xf32>
    %19 = vector.shape_cast %16 : vector<16x128xf32> to vector<1x16x128xf32>
    tpu.vector_store %arg3[%c0_6, %c0_7, %c0_8], %19 {strides = array<i32>} : memref<2x16x128xf32, #tpu.memory_space<vmem>>, vector<1x16x128xf32>,
    %20 = vector.broadcast %6 : f32 to vector<16x128xf32>
    %21 = arith.mulf %1, %20 : vector<16x128xf32>
    %22 = vector.broadcast %7 : f32 to vector<16x128xf32>
    %23 = arith.mulf %3, %22 : vector<16x128xf32>
    %24 = arith.addf %21, %23 : vector<16x128xf32>
    %25 = vector.broadcast %9 : f32 to vector<16x128xf32>
    %26 = arith.addf %24, %25 : vector<16x128xf32>
    %c1_9 = arith.constant 1 : index
    %c0_10 = arith.constant 0 : index
    %c0_11 = arith.constant 0 : index
    %27 = vector.load %arg3[%c1_9, %c0_10, %c0_11] : memref<2x16x128xf32, #tpu.memory_space<vmem>>, vector<1x16x128xf32>
    %28 = vector.shape_cast %27 : vector<1x16x128xf32> to vector<16x128xf32>
    %29 = vector.shape_cast %26 : vector<16x128xf32> to vector<1x16x128xf32>
    tpu.vector_store %arg3[%c1_9, %c0_10, %c0_11], %29 {strides = array<i32>} : memref<2x16x128xf32, #tpu.memory_space<vmem>>, vector<1x16x128xf32>,
    return
  }
  func.func @transform_0(%arg0: i32) -> i32 {
    %c0_i32 = arith.constant 0 : i32
    %c0_i32_0 = arith.constant 0 : i32
    return %c0_i32 : i32
  }
  func.func @transform_1(%arg0: i32) -> (i32, i32, i32) {
    %c0_i32 = arith.constant 0 : i32
    %c0_i32_0 = arith.constant 0 : i32
    %c0_i32_1 = arith.constant 0 : i32
    return %c0_i32, %arg0, %c0_i32_0 : i32, i32, i32
  }
  func.func @transform_2(%arg0: i32) -> (i32, i32, i32) {
    %c0_i32 = arith.constant 0 : i32
    %c0_i32_0 = arith.constant 0 : i32
    %c0_i32_1 = arith.constant 0 : i32
    return %c0_i32, %arg0, %c0_i32_0 : i32, i32, i32
  }
}

</mosaic_0001>

<bundles_post_ra>
// kernel: tpu_custom_call.1
= control target key start
LH: loop header
LB: loop body
LE: loop exit
PB: predicated region body
PF: predicated region fallthrough
CT: control target
= control target key end

     0   :  { %7 = vsyncpa [#allocation5], 0  ;;  %s720_s0 = inlined_call_operand.hbm [shape: f32[6], index: 0, kind: input, shape index: {}]   ;;  %s721_s1 = inlined_call_operand.hbm [shape: f32[2,32,128], index: 1, kind: input, shape index: {}]   ;;  %s722_s2 = inlined_call_operand.hbm [shape: f32[2,32,128], index: 2, kind: output, shape index: {}]  }
   0x1   :  { %8 = vsyncpa [#allocation3], 0 }
   0x2   :  { %10 = vsyncpa [#allocation3 + $0x1], 0 }
   0x3   :  { %11 = vsyncpa [#allocation4], 0 }
   0x4   :  { %13 = vsyncpa [#allocation4 + $0x1], 0  ;;  %s560_s9 = smov 0   ;;  %s562_s10 = smov 0  }
   0x5   :  { %s564_s11 = smov 0   ;;  %s566_s12 = smov 0  }
   0x6 LB: > { %s581_s13 = sadd.s32 4294967295, %s529_s12   ;;  %s367_s14 = sadd.s32 4294967294, %s529_s12   ;;  %s529_s12 = sphi %s566_s12, %s731_s12   ;;  %s525_s11 = sphi %s564_s11, %s730_s11   ;;  %s521_s10 = sphi %s562_s10, %s729_s10   ;;  %s517_s9 = sphi %s560_s9, %s728_s9  }
   0x7   : > { %s585_s15 = sadd.s32 1, %s529_s12   ;;  %s47_s16 = sadd.s32 1, %s525_s11 }
   0x8   : > { %s44_s17 = ssub.s32 %s529_s12, %s585_s15  ;;  %p54_p0 = scmp.ne.s32.totalorder %s525_s11, %s521_s10 }
   0x9   : > { %p45_p1 = scmp.eq.s32.totalorder %s44_s17, 0  ;;  %p55_p2 = scmp.eq.s32.totalorder %s529_s12, 0 }
   0xa   : > { %p60_p3 = scmp.ne.s32.totalorder %s521_s10, %s517_s9  ;;  %p61_p4 = scmp.eq.s32.totalorder %s581_s13, 0 }
   0xb   : > { %s597_s18 = scalar_select %p45_p1, %s525_s11, %s47_s16  }
   0xc   : > { %p599_p5 = por %p55_p2, %p54_p0  ;;  %p605_p6 = por %p61_p4, %p60_p3 }
   0xd   : > { %p84_p7 = scmp.eq.s32.totalorder %s581_s13, 1  ;;  %p90_p8 = scmp.eq.s32.totalorder %s367_s14, 1 }
   0xe   : > { %p368_p9 = scmp.ge.s32.totalorder %s529_s12, 1  ;;  %p97_p10 = scmp.lt.s32.totalorder %s529_s12, 3 }
   0xf   : > { %p612_p11 = por %p84_p7, %p54_p0  ;;  %p616_p12 = por %p90_p8, %p60_p3 }
  0x10   : > { %p620_p13 = pnand %p368_p9, %p97_p10  ;;  %s474_s26 = scalar_lea.hbm %s720_s0, 16 }
  0x11   : > { %p475_p0 = scmp.ne.s32.totalorder %s720_s0, %s474_s26  ;;  %p481_p9 = scmp.lt.u32.totalorder %s474_s26, %s720_s0 }
  0x12   : > { %p417_p1 = pneg %p620_p13 }
  0x14   : > { %p418_p2 = pnand %p417_p1, %p61_p4 }
  0x16   : > { %p476_p3 = pneg %p418_p2 }
  0x18   : > { %p477_p7 = pnand %p476_p3, %p475_p0 }
  0x1a   : > { %p478_p8 = pneg %p477_p7 }
  0x1c   : > { %p483_p10 = pnand %p481_p9, %p478_p8 }
  0x1e   : > { %486 = shalt.err (!%p483_p10)
}
  0x1f   : > { %s531_s3 = smov [#allocation2]   ;;  %p370_p1 = scmp.ge.s32.totalorder %s529_s12, 2 }
  0x20   : > { %420 = dma.hbm_to_smem (!%p418_p2), %s720_s0, 16, %s531_s3, [#allocation5]  }
  0x21   : > { %115 = sbr.rel (%p370_p1) target bundleno = 53 (0x35), region = 20 }
  0x28   : > { %s119_s6 = sand.u32 1, %s525_s11   ;;  %s394_s7 = sshll.u32 %s529_s12, 8 }
  0x29   : > { %s371_s8 = sshll.u32 %s119_s6, 5  ;;  %s129_s17 = scalar_lea.hbm %s721_s1, %s394_s7 }
  0x2a   : > { %s398_s24 = scalar_select %p599_p5, [#allocation0], [#allocation12] }
  0x2b   : > { %s123_s25 = scalar_lea.vmem [#allocation6], %s371_s8  ;;  %s532_s28 = smov 512  }
  0x2c   : > { %s142_s26 = sshll.u32 %s123_s25, 4  ;;  %s134_s27 = sld [smem:[%s398_s24]]   ;;  %s143_s26 = int_to_ptr.vmem [resolvable:$true] %s142_s26 }
  0x2d   : > { %399 = sst [smem:[#allocation9]] (%p599_p5), %s532_s28  ;;  %s533_s29 = smov 256  }
  0x2e   : > { %400 = sst [smem:[#allocation9 + $0x1]] (%p599_p5), %s533_s29  ;;  %s534_s30 = smov 2  }
  0x2f   : > { %401 = sst [smem:[#allocation9 + $0x2]] (%p599_p5), %s534_s30  ;;  %s535_s3 = smov 128  }
  0x30   : > { %402 = sst [smem:[#allocation9 + $0x3]] (%p599_p5), %s535_s3  ;;  %s536_s5 = smov 8  }
  0x31   : > { %403 = sst [smem:[#allocation9 + $0x4]] (%p599_p5), %s535_s3  ;;  %s120_s8 = scalar_lea.sflag [#allocation3], %s119_s6 }
  0x32   : > { %s374_s4 = sshll.u32 %s134_s27, 26  ;;  %404 = sst [smem:[#allocation9 + $0x5]] (%p599_p5), %s536_s5 }
  0x33   : > { %s375_s7 = sadd.s32 134217728, %s374_s4  ;;  %s537_s14 = smov [#allocation8]  }
  0x34   : > { %405 = dma.general (%p599_p5), %s129_s17, 512, %s143_s26, %s120_s8, %s537_s14, [#allocation9], %s375_s7, 0  }
  0x35 PF: > { %167 = sbr.rel (%p620_p13) target bundleno = 93 (0x5d), region = 28 }
  0x3c   : > { %504 = dma.done.wait (%p61_p4), [#allocation5], 16  }
  0x3d   : > { %506 = vsyncadd (%p61_p4), [#allocation5], 4294967280  ;;  %s671_s16 = sand.u32 1, %s521_s10  }
  0x3e   : > { %s378_s6 = sshll.u32 %s671_s16, 5  ;;  %s174_s19 = scalar_lea.sflag [#allocation3], %s671_s16 }
  0x3f   : > { %s177_s17 = scalar_lea.vmem [#allocation6], %s378_s6 }
  0x40   : > { %508 = dma.done.wait (%p605_p6), %s174_s19, 512  }
  0x41   : > { %510 = vsyncadd (%p605_p6), %s174_s19, 4294966784 }
  0x42   : > { %182 = sfence }
  0x43   : > { %s206_s23 = sld [smem:[#allocation2]]  ;;  %s382_s24 = sld [smem:[#allocation2 + $0x1]]  ;;  %v201_v0 = vld [vmem:[%s177_s17] sm:$0xff]  ;;  %v202_v1 = vld [vmem:[%s177_s17 + $0x8] sm:$0xff]  ;;  %v380_v2 = vld [vmem:[%s177_s17 + $0x10] sm:$0xff] }
  0x44   : > { %s385_s25 = sld [smem:[#allocation2 + $0x4]]  ;;  %s383_s26 = sld [smem:[#allocation2 + $0x2]]  ;;  %v381_v3 = vld [vmem:[%s177_s17 + $0x18] sm:$0xff] }
  0x45   : > { %s384_s27 = sld [smem:[#allocation2 + $0x3]]  ;;  %s386_s28 = sld [smem:[#allocation2 + $0x5]] }
  0x46   : > { %s198_s20 = scalar_lea.vmem [#allocation7], %s378_s6  ;;  %s240_s29 = scalar_lea.sflag [#allocation4], %s671_s16 }
  0x49   : > { %v212_v4 = vstv %s206_s23  ;;  %v215_v6 = vstv %s382_s24 }
  0x4a   : > { %v213_v5 = vmul.f32 %v212_v4, %v201_v0  ;;  %v214_v7 = vmul.f32 %v212_v4, %v202_v1  ;;  %v216_v8 = vmul.f32 %v380_v2, %v215_v6  ;;  %v217_v9 = vmul.f32 %v381_v3, %v215_v6 }
  0x4b   : > { %v225_v10 = vstv %s383_s26  ;;  %v228_v11 = vstv %s384_s27  ;;  %v220_v12 = vstv %s385_s25  ;;  %v233_v18 = vstv %s386_s28 }
  0x4c   : > { %v226_v13 = vmul.f32 %v225_v10, %v201_v0  ;;  %v229_v14 = vmul.f32 %v380_v2, %v228_v11  ;;  %v227_v15 = vmul.f32 %v225_v10, %v202_v1  ;;  %v218_v16 = vadd.f32 %v216_v8, %v213_v5 }
  0x4d   : > { %v219_v17 = vadd.f32 %v217_v9, %v214_v7  ;;  %v230_v19 = vmul.f32 %v381_v3, %v228_v11 }
  0x4e   : > { %v231_v20 = vadd.f32 %v229_v14, %v226_v13  ;;  %v221_v21 = vadd.f32 %v220_v12, %v218_v16 }
  0x4f   : > { %v222_v22 = vadd.f32 %v220_v12, %v219_v17  ;;  %v232_v23 = vadd.f32 %v230_v19, %v227_v15 }
  0x50   : > { %v234_v24 = vadd.f32 %v233_v18, %v231_v20  ;;  %223 = vst [vmem:[%s198_s20] sm:$0xff] %v221_v21 }
  0x51   : > { %224 = vst [vmem:[%s198_s20 + $0x8] sm:$0xff] %v222_v22  ;;  %v235_v25 = vadd.f32 %v233_v18, %v232_v23 }
  0x52   : > { %387 = vst [vmem:[%s198_s20 + $0x10] sm:$0xff] %v234_v24 }
  0x53   : > { %388 = vst [vmem:[%s198_s20 + $0x18] sm:$0xff] %v235_v25 }
  0x54   : > { %s395_s30 = sshll.u32 %s581_s13, 8  ;;  %s269_s3 = sshll.u32 %s198_s20, 4  ;;  %s270_s3 = int_to_ptr.vmem [resolvable:$true] %s269_s3 }
  0x55   : > { %s252_s7 = scalar_lea.hbm %s722_s2, %s395_s30  ;;  %s538_s8 = smov 256  }
  0x56   : > { %409 = sst [smem:[#allocation11]] (%p612_p11), %s538_s8  ;;  %s539_s14 = smov 512  }
  0x57   : > { %410 = sst [smem:[#allocation11 + $0x1]] (%p612_p11), %s539_s14  ;;  %s540_s16 = smov 2  }
  0x58   : > { %411 = sst [smem:[#allocation11 + $0x2]] (%p612_p11), %s540_s16  ;;  %s541_s6 = smov 128  }
  0x59   : > { %412 = sst [smem:[#allocation11 + $0x3]] (%p612_p11), %s541_s6  ;;  %s542_s13 = smov 8  }
  0x5a   : > { %413 = sst [smem:[#allocation11 + $0x4]] (%p612_p11), %s541_s6  ;;  %s543_s19 = smov [#allocation10]  }
  0x5b   : > { %414 = sst [smem:[#allocation11 + $0x5]] (%p612_p11), %s542_s13  ;;  %s544_s17 = smov 0  }
  0x5c   : > { %415 = dma.general (%p612_p11), %s270_s3, 512, %s252_s7, %s240_s29, %s543_s19, [#allocation11], %s544_s17, 0  }
  0x5d PF: > { %s297_s23 = sand.u32 1, %s517_s9   ;;  %p422_p4 = pnand %p370_p1, %p616_p12 }
  0x5e   : > { %s298_s24 = scalar_lea.sflag [#allocation4], %s297_s23 }
  0x5f   : > { %512 = dma.done.wait (!%p422_p4), %s298_s24, 512  }
  0x60   : > { %514 = vsyncadd (!%p422_p4), %s298_s24, 4294966784  ;;  %p16_p5 = scmp.ge.s32.totalorder %s585_s15, 4   ;;  %s728_s9 = smov %s521_s10 }
  0x61   : > { %s729_s10 = smov %s525_s11  ;;  %s730_s11 = smov %s597_s18 }
  0x62   : > { %s731_s12 = smov %s585_s15  ;;  %18 = sbr.rel (!%p16_p5) target bundleno = 6 (0x6), region = 90 }
  0x69   :  { %303 = vsyncpa [#allocation3], 1 }
  0x6a   :  { %305 = vsyncpa [#allocation3 + $0x1], 1 }
  0x6b   :  { %306 = vsyncpa [#allocation4], 1 }
  0x6c   :  { %308 = vsyncpa [#allocation4 + $0x1], 1 }
  0x6d   :  { %309 = vsyncpa [#allocation5], 1 }
  0x6e   :  { %311 = vsyncpa [#allocation5 + $0x1], 1 }

</bundles_post_ra>
